<compile_context>
chip_gen: v7x
topology: tpu7x:2x2x1
jax: 0.10.0
libtpu: 0.0.40
codegen_flags: <defaults>
</compile_context>

<pallas_src>
import jax
import jax.numpy as jnp
from jax.experimental import pallas as pl
from jax.experimental.pallas import tpu as pltpu

EPS = 1e-5


# ------------------------------ Pallas kernel --------------------------------

def resblock_kernel(x_ref, w1a_ref, w2_ref, vec_ref, o_ref):
    """Fused ResBlock forward for one batch tile.

    x_ref  : (Bt, L, Cin)        bf16 activations (channels on the lane axis)
    w1a_ref: (3*Cin, 2*Cout)     bf16 [conv1 (BN1-scale folded) | skip (BN3-scale folded)]
    w2_ref : (3, Cout, Cout)     bf16 conv2 taps (BN2-scale folded)
    vec_ref: (4, Cout)           f32  rows = [t1, t2, t3, s3]
    o_ref  : (Bt, L, Cout)       f32 output
    """
    Bt, L, Cin = x_ref.shape
    Cout = o_ref.shape[-1]
    M = Bt * L

    x = x_ref[...]                                   # (Bt, L, Cin) bf16
    vec = vec_ref[...]
    t1, t2, t3, s3 = vec[0:1, :], vec[1:2, :], vec[2:3, :], vec[3:4, :]

    def taps(h):
        # Zero-padded conv taps: prv[l] = h[l-1], nxt[l] = h[l+1].
        b, l, c = h.shape
        z = jnp.zeros((b, 1, c), h.dtype)
        prv = jnp.concatenate([z, h[:, :l - 1, :]], axis=1)
        nxt = jnp.concatenate([h[:, 1:, :], z], axis=1)
        return prv, nxt

    # ---- conv1 (+ fused 1x1 skip) as one wide-N matmul: (M, 3Cin)@(3Cin, 2Cout)
    xp, xn = taps(x)
    win = jnp.concatenate([xp, x, xn], axis=-1).reshape(M, 3 * Cin)
    acc = jnp.dot(win, w1a_ref[...], preferred_element_type=jnp.float32)  # (M, 2*Cout)
    h1 = jnp.maximum(acc[:, :Cout] + t1, 0.0)        # BN1 shift + ReLU (scale in w1)
    skip = acc[:, Cout:]                             # (Ws*s3) @ x ; bias folded into t3

    # ---- conv2: three accumulating K=Cout dots on L-shifted views
    h1b = h1.astype(jnp.bfloat16).reshape(Bt, L, Cout)
    hp, hn = taps(h1b)
    acc2 = jnp.dot(hp.reshape(M, Cout), w2_ref[0], preferred_element_type=jnp.float32)
    acc2 = acc2 + jnp.dot(h1b.reshape(M, Cout), w2_ref[1],
                          preferred_element_type=jnp.float32)
    acc2 = acc2 + jnp.dot(hn.reshape(M, Cout), w2_ref[2],
                          preferred_element_type=jnp.float32)
    h2 = jnp.maximum(acc2 + t2, 0.0)                 # BN2 shift + ReLU

    # ---- residual add, then BN3 -> ReLU (matches the PyTorch op order)
    y = h2 * s3 + skip + t3                          # skip already carries s3
    o_ref[...] = jnp.maximum(y, 0.0).reshape(Bt, L, Cout)


# -------------------------------- wrapper -------------------------------------

def fold_bn(conv_bias, gamma, beta, mean, var):
    """Fold Conv bias + inference-mode BatchNorm1d into per-channel scale/shift."""
    s = gamma / jnp.sqrt(var + EPS)
    return s, (conv_bias - mean) * s + beta


def res_block_forward(x_ncl, p):
    """x_ncl: (B, Cin, L) like the PyTorch module.  Returns (B, Cout, L) f32."""
    B, Cin, L = x_ncl.shape
    Cout = p['w1'].shape[-1]
    f32, bf16 = jnp.float32, jnp.bfloat16

    # channels-last so Cout rides the 128-lane axis (lane-dense output stores).
    x = jnp.transpose(x_ncl, (0, 2, 1)).astype(bf16)

    s1, t1 = fold_bn(p['b1'], p['g1'], p['be1'], p['m1'], p['v1'])
    s2, t2 = fold_bn(p['b2'], p['g2'], p['be2'], p['m2'], p['v2'])
    s3, t3 = fold_bn(p['bs'], p['g3'], p['be3'], p['m3'], p['v3'])

    # BN scales folded into weight columns (exact); im2col tap-major layout.
    w1s = (p['w1'] * s1).reshape(3 * Cin, Cout)                    # (3*Cin, Cout)
    wss = p['ws'][0] * s3                                          # (Cin, Cout)
    skip_pad = jnp.zeros((3, Cin, Cout), f32).at[1].set(wss)       # center tap only
    w1aug = jnp.concatenate([w1s, skip_pad.reshape(3 * Cin, Cout)],
                            axis=1).astype(bf16)                   # (3*Cin, 2*Cout)
    w2s = (p['w2'] * s2).astype(bf16)                              # (3, Cout, Cout)

    # Pack the per-channel vectors into ONE small f32 input (one DMA).
    vec = jnp.stack([t1, t2, t3, s3], axis=0).astype(f32)          # (4, Cout)

    # Grid over batch: "parallel" -> megacore split + DMA/compute pipelining.
    Bt = 1
    grid = (B // Bt,)
    out_blc = pl.pallas_call(
        resblock_kernel,
        out_shape=jax.ShapeDtypeStruct((B, L, Cout), f32),
        grid_spec=pltpu.PrefetchScalarGridSpec(
            num_scalar_prefetch=0,
            grid=grid,
            in_specs=[
                pl.BlockSpec((Bt, L, Cin), lambda b: (b, 0, 0)),
                pl.BlockSpec((3 * Cin, 2 * Cout), lambda b: (0, 0)),
                pl.BlockSpec((3, Cout, Cout), lambda b: (0, 0, 0)),
                pl.BlockSpec((4, Cout), lambda b: (0, 0)),
            ],
            out_specs=pl.BlockSpec((Bt, L, Cout), lambda b: (b, 0, 0)),
        ),
        compiler_params=pltpu.CompilerParams(
            dimension_semantics=("parallel",),
            # Explicit scoped-VMEM budget with headroom; fits v5e/v6e/v7x.
            vmem_limit_bytes=32 * 1024 * 1024,
        ),
    )(x, w1aug, w2s, vec)

    return jnp.transpose(out_blc, (0, 2, 1))          # back to PyTorch (B, Cout, L)


# --------------------------- parameter creation -------------------------------

def make_params(key, cin, cout):
    ks = jax.random.split(key, 18)

    def nrm(k, shape, s=0.05):
        return (s * jax.random.normal(k, shape)).astype(jnp.float32)

    p = dict(
        w1=nrm(ks[0], (3, cin, cout)), b1=nrm(ks[1], (cout,)),
        w2=nrm(ks[2], (3, cout, cout)), b2=nrm(ks[3], (cout,)),
        ws=nrm(ks[4], (1, cin, cout)), bs=nrm(ks[5], (cout,)),
    )
    # inference-mode BatchNorm1d params (non-trivial, to exercise the fold)
    for idx, i in enumerate((1, 2, 3)):
        k = 6 + 4 * idx
        p[f'g{i}'] = (1.0 + 0.1 * jax.random.normal(ks[k], (cout,))).astype(jnp.float32)
        p[f'be{i}'] = nrm(ks[k + 1], (cout,))
        p[f'm{i}'] = nrm(ks[k + 2], (cout,))
        p[f'v{i}'] = (1.0 + 0.1 * jax.random.uniform(ks[k + 3], (cout,))).astype(jnp.float32)
    return p


# ----------------------- pure-JAX reference (for check) ----------------------

def _ref_conv1d(x, w, b, pad):
    # x: (B, L, Cin) f32; w: (K, Cin, Cout); stride=1 conv with zero padding.
    B, L, _ = x.shape
    K, _, Cout = w.shape
    Lout = L + 2 * pad - K + 1
    xp = jnp.pad(x, ((0, 0), (pad, pad), (0, 0)))
    acc = jnp.zeros((B, Lout, Cout), jnp.float32)
    for t in range(K):
        acc = acc + jnp.einsum('blc,co->blo', xp[:, t:t + Lout, :], w[t],
                               precision=jax.lax.Precision.HIGHEST)
    return acc + b


def _ref_bn_relu(x, g, be, m, v):
    return jnp.maximum((x - m) / jnp.sqrt(v + EPS) * g + be, 0.0)


def _ref_resblock(x_ncl, p):
    x = jnp.transpose(x_ncl, (0, 2, 1)).astype(jnp.float32)
    h = _ref_bn_relu(_ref_conv1d(x, p['w1'], p['b1'], 1),
                     p['g1'], p['be1'], p['m1'], p['v1'])
    h = _ref_bn_relu(_ref_conv1d(h, p['w2'], p['b2'], 1),
                     p['g2'], p['be2'], p['m2'], p['v2'])
    s = _ref_conv1d(x, p['ws'], p['bs'], 0)
    y = _ref_bn_relu(h + s, p['g3'], p['be3'], p['m3'], p['v3'])
    return jnp.transpose(y, (0, 2, 1))


# ---------------------------------- main --------------------------------------

if __name__ == "__main__":
    key = jax.random.PRNGKey(0)
    kx, kp = jax.random.split(key)

    # PyTorch-style input (B, in_channels, L); out_channels=128 keeps the
    # output lane-dense on the 128-lane axis.
    B, Cin, Cout, L = 2, 4, 128, 16
    x = jax.random.normal(kx, (B, Cin, L), jnp.float32)
    params = make_params(kp, Cin, Cout)

    out = res_block_forward(x, params)
    jax.block_until_ready(out)
    assert out.shape == (B, Cout, L)

    ref = _ref_resblock(x, params)
    max_err = float(jnp.max(jnp.abs(out - ref)))
    # bf16 MXU inputs with f32 accumulation vs a full-f32 reference.
    assert jnp.allclose(out, ref, atol=5e-3, rtol=2e-2), f"max abs err {max_err}"

    print("KERNEL_OK")
</pallas_src>

<mosaic_0001>
module attributes {stable_mosaic.version = 11 : i64} {
  func.func @resblock_kernel(%arg0: i32, %arg1: memref<1x16x4xbf16, #tpu.memory_space<vmem>>, %arg2: memref<12x256xbf16, #tpu.memory_space<vmem>>, %arg3: memref<3x128x128xbf16, #tpu.memory_space<vmem>>, %arg4: memref<4x128xf32, #tpu.memory_space<vmem>>, %arg5: memref<1x16x128xf32, #tpu.memory_space<vmem>>) attributes {dimension_semantics = [#tpu.dimension_semantics<parallel>], iteration_bounds = array<i64: 2>, scalar_prefetch = 0 : i64, scratch_operands = 0 : i64, tpu.core_type = #tpu.core_type<tc>, window_params = [{transform_indices = @transform_0, window_bounds = array<i64: 1, 16, 4>}, {pipeline_mode = #tpu.pipeline_mode<synchronous>, transform_indices = @transform_1, window_bounds = array<i64: 12, 256>}, {pipeline_mode = #tpu.pipeline_mode<synchronous>, transform_indices = @transform_2, window_bounds = array<i64: 3, 128, 128>}, {pipeline_mode = #tpu.pipeline_mode<synchronous>, transform_indices = @transform_3, window_bounds = array<i64: 4, 128>}, {transform_indices = @transform_4, window_bounds = array<i64: 1, 16, 128>}]} {
    %c0 = arith.constant 0 : index
    %c0_0 = arith.constant 0 : index
    %c0_1 = arith.constant 0 : index
    %0 = vector.load %arg1[%c0, %c0_0, %c0_1] : memref<1x16x4xbf16, #tpu.memory_space<vmem>>, vector<1x16x4xbf16>
    %c0_2 = arith.constant 0 : index
    %c0_3 = arith.constant 0 : index
    %1 = vector.load %arg4[%c0_2, %c0_3] : memref<4x128xf32, #tpu.memory_space<vmem>>, vector<4x128xf32>
    %2 = vector.extract_strided_slice %1 {offsets = [0, 0], sizes = [1, 128], strides = [1, 1]} : vector<4x128xf32> to vector<1x128xf32>
    %3 = vector.extract_strided_slice %1 {offsets = [1, 0], sizes = [1, 128], strides = [1, 1]} : vector<4x128xf32> to vector<1x128xf32>
    %4 = vector.extract_strided_slice %1 {offsets = [2, 0], sizes = [1, 128], strides = [1, 1]} : vector<4x128xf32> to vector<1x128xf32>
    %5 = vector.extract_strided_slice %1 {offsets = [3, 0], sizes = [1, 128], strides = [1, 1]} : vector<4x128xf32> to vector<1x128xf32>
    %cst = arith.constant 0.000000e+00 : bf16
    %6 = vector.broadcast %cst : bf16 to vector<1x1x4xbf16>
    %7 = vector.extract_strided_slice %0 {offsets = [0, 0, 0], sizes = [1, 15, 4], strides = [1, 1, 1]} : vector<1x16x4xbf16> to vector<1x15x4xbf16>
    %8 = tpu.concatenate %6, %7 in 1 : vector<1x1x4xbf16>, vector<1x15x4xbf16> -> vector<1x16x4xbf16>
    %9 = vector.extract_strided_slice %0 {offsets = [0, 1, 0], sizes = [1, 15, 4], strides = [1, 1, 1]} : vector<1x16x4xbf16> to vector<1x15x4xbf16>
    %10 = tpu.concatenate %9, %6 in 1 : vector<1x15x4xbf16>, vector<1x1x4xbf16> -> vector<1x16x4xbf16>
    %11 = tpu.concatenate %8, %0, %10 in 2 : vector<1x16x4xbf16>, vector<1x16x4xbf16>, vector<1x16x4xbf16> -> vector<1x16x12xbf16>
    %12 = vector.shape_cast %11 : vector<1x16x12xbf16> to vector<16x12xbf16>
    %c0_4 = arith.constant 0 : index
    %c0_5 = arith.constant 0 : index
    %13 = vector.load %arg2[%c0_4, %c0_5] : memref<12x256xbf16, #tpu.memory_space<vmem>>, vector<12x256xbf16>
    %cst_6 = arith.constant dense<0.000000e+00> : vector<16x256xf32>
    %14 = tpu.matmul %12, %13, %cst_6 {dimension_numbers = #tpu.dot_dimension_numbers<[1], [0], [0], [1], [0, 0, 1, 1], [], []>} : vector<16x12xbf16>, vector<12x256xbf16>, vector<16x256xf32> -> vector<16x256xf32>
    %15 = vector.extract_strided_slice %14 {offsets = [0, 0], sizes = [16, 128], strides = [1, 1]} : vector<16x256xf32> to vector<16x128xf32>
    %16 = vector.broadcast %2 : vector<1x128xf32> to vector<16x128xf32>
    %17 = arith.addf %15, %16 : vector<16x128xf32>
    %cst_7 = arith.constant 0.000000e+00 : f32
    %18 = vector.broadcast %cst_7 : f32 to vector<16x128xf32>
    %19 = arith.maximumf %17, %18 : vector<16x128xf32>
    %20 = vector.extract_strided_slice %14 {offsets = [0, 128], sizes = [16, 128], strides = [1, 1]} : vector<16x256xf32> to vector<16x128xf32>
    %21 = arith.truncf %19 : vector<16x128xf32> to vector<16x128xbf16>
    %22 = vector.shape_cast %21 : vector<16x128xbf16> to vector<1x16x128xbf16>
    %cst_8 = arith.constant 0.000000e+00 : bf16
    %23 = vector.broadcast %cst_8 : bf16 to vector<1x1x128xbf16>
    %24 = vector.extract_strided_slice %22 {offsets = [0, 0, 0], sizes = [1, 15, 128], strides = [1, 1, 1]} : vector<1x16x128xbf16> to vector<1x15x128xbf16>
    %25 = tpu.concatenate %23, %24 in 1 : vector<1x1x128xbf16>, vector<1x15x128xbf16> -> vector<1x16x128xbf16>
    %26 = vector.extract_strided_slice %22 {offsets = [0, 1, 0], sizes = [1, 15, 128], strides = [1, 1, 1]} : vector<1x16x128xbf16> to vector<1x15x128xbf16>
    %27 = tpu.concatenate %26, %23 in 1 : vector<1x15x128xbf16>, vector<1x1x128xbf16> -> vector<1x16x128xbf16>
    %28 = vector.shape_cast %25 : vector<1x16x128xbf16> to vector<16x128xbf16>
    %c0_9 = arith.constant 0 : index
    %c0_10 = arith.constant 0 : index
    %c0_11 = arith.constant 0 : index
    %29 = vector.load %arg3[%c0_9, %c0_10, %c0_11] : memref<3x128x128xbf16, #tpu.memory_space<vmem>>, vector<1x128x128xbf16>
    %30 = vector.shape_cast %29 : vector<1x128x128xbf16> to vector<128x128xbf16>
    %cst_12 = arith.constant dense<0.000000e+00> : vector<16x128xf32>
    %31 = tpu.matmul %28, %30, %cst_12 {dimension_numbers = #tpu.dot_dimension_numbers<[1], [0], [0], [1], [0, 0, 1, 1], [], []>} : vector<16x128xbf16>, vector<128x128xbf16>, vector<16x128xf32> -> vector<16x128xf32>
    %32 = vector.shape_cast %22 : vector<1x16x128xbf16> to vector<16x128xbf16>
    %c1 = arith.constant 1 : index
    %c0_13 = arith.constant 0 : index
    %c0_14 = arith.constant 0 : index
    %33 = vector.load %arg3[%c1, %c0_13, %c0_14] : memref<3x128x128xbf16, #tpu.memory_space<vmem>>, vector<1x128x128xbf16>
    %34 = vector.shape_cast %33 : vector<1x128x128xbf16> to vector<128x128xbf16>
    %cst_15 = arith.constant dense<0.000000e+00> : vector<16x128xf32>
    %35 = tpu.matmul %32, %34, %cst_15 {dimension_numbers = #tpu.dot_dimension_numbers<[1], [0], [0], [1], [0, 0, 1, 1], [], []>} : vector<16x128xbf16>, vector<128x128xbf16>, vector<16x128xf32> -> vector<16x128xf32>
    %36 = arith.addf %31, %35 : vector<16x128xf32>
    %37 = vector.shape_cast %27 : vector<1x16x128xbf16> to vector<16x128xbf16>
    %c2 = arith.constant 2 : index
    %c0_16 = arith.constant 0 : index
    %c0_17 = arith.constant 0 : index
    %38 = vector.load %arg3[%c2, %c0_16, %c0_17] : memref<3x128x128xbf16, #tpu.memory_space<vmem>>, vector<1x128x128xbf16>
    %39 = vector.shape_cast %38 : vector<1x128x128xbf16> to vector<128x128xbf16>
    %cst_18 = arith.constant dense<0.000000e+00> : vector<16x128xf32>
    %40 = tpu.matmul %37, %39, %cst_18 {dimension_numbers = #tpu.dot_dimension_numbers<[1], [0], [0], [1], [0, 0, 1, 1], [], []>} : vector<16x128xbf16>, vector<128x128xbf16>, vector<16x128xf32> -> vector<16x128xf32>
    %41 = arith.addf %36, %40 : vector<16x128xf32>
    %42 = vector.broadcast %3 : vector<1x128xf32> to vector<16x128xf32>
    %43 = arith.addf %41, %42 : vector<16x128xf32>
    %cst_19 = arith.constant 0.000000e+00 : f32
    %44 = vector.broadcast %cst_19 : f32 to vector<16x128xf32>
    %45 = arith.maximumf %43, %44 : vector<16x128xf32>
    %46 = vector.broadcast %5 : vector<1x128xf32> to vector<16x128xf32>
    %47 = arith.mulf %45, %46 : vector<16x128xf32>
    %48 = arith.addf %47, %20 : vector<16x128xf32>
    %49 = vector.broadcast %4 : vector<1x128xf32> to vector<16x128xf32>
    %50 = arith.addf %48, %49 : vector<16x128xf32>
    %cst_20 = arith.constant 0.000000e+00 : f32
    %51 = vector.broadcast %cst_20 : f32 to vector<16x128xf32>
    %52 = arith.maximumf %50, %51 : vector<16x128xf32>
    %53 = vector.shape_cast %52 : vector<16x128xf32> to vector<1x16x128xf32>
    %c0_21 = arith.constant 0 : index
    %c0_22 = arith.constant 0 : index
    %c0_23 = arith.constant 0 : index
    %54 = vector.load %arg5[%c0_21, %c0_22, %c0_23] : memref<1x16x128xf32, #tpu.memory_space<vmem>>, vector<1x16x128xf32>
    tpu.vector_store %arg5[%c0_21, %c0_22, %c0_23], %53 {strides = array<i32>} : memref<1x16x128xf32, #tpu.memory_space<vmem>>, vector<1x16x128xf32>,
    return
  }
  func.func @transform_0(%arg0: i32) -> (i32, i32, i32) {
    %c0_i32 = arith.constant 0 : i32
    %c0_i32_0 = arith.constant 0 : i32
    %c0_i32_1 = arith.constant 0 : i32
    return %arg0, %c0_i32, %c0_i32_0 : i32, i32, i32
  }
  func.func @transform_1(%arg0: i32) -> (i32, i32) {
    %c0_i32 = arith.constant 0 : i32
    %c0_i32_0 = arith.constant 0 : i32
    %c0_i32_1 = arith.constant 0 : i32
    return %c0_i32, %c0_i32_0 : i32, i32
  }
  func.func @transform_2(%arg0: i32) -> (i32, i32, i32) {
    %c0_i32 = arith.constant 0 : i32
    %c0_i32_0 = arith.constant 0 : i32
    %c0_i32_1 = arith.constant 0 : i32
    %c0_i32_2 = arith.constant 0 : i32
    return %c0_i32, %c0_i32_0, %c0_i32_1 : i32, i32, i32
  }
  func.func @transform_3(%arg0: i32) -> (i32, i32) {
    %c0_i32 = arith.constant 0 : i32
    %c0_i32_0 = arith.constant 0 : i32
    %c0_i32_1 = arith.constant 0 : i32
    return %c0_i32, %c0_i32_0 : i32, i32
  }
  func.func @transform_4(%arg0: i32) -> (i32, i32, i32) {
    %c0_i32 = arith.constant 0 : i32
    %c0_i32_0 = arith.constant 0 : i32
    %c0_i32_1 = arith.constant 0 : i32
    return %arg0, %c0_i32, %c0_i32_0 : i32, i32, i32
  }
}

</mosaic_0001>

<bundles_post_ra>
// kernel: tpu_custom_call.1
= control target key start
LH: loop header
LB: loop body
LE: loop exit
PB: predicated region body
PF: predicated region fallthrough
CT: control target
= control target key end

     0   :  { %9 = vsyncpa [#allocation3], 0  ;;  %s1333_s0 = inlined_call_operand.vmem [shape: bf16[2,16,4], index: 0, kind: input, shape index: {}]   ;;  %s1334_s1 = inlined_call_operand.vmem [shape: bf16[12,256], index: 1, kind: input, shape index: {}]   ;;  %s1335_s2 = inlined_call_operand.hbm [shape: bf16[3,128,128], index: 2, kind: input, shape index: {}]   ;;  %s1336_s3 = inlined_call_operand.vmem [shape: f32[4,128], index: 3, kind: input, shape index: {}]   ;;  %s1337_s4 = inlined_call_operand.hbm [shape: f32[2,16,128], index: 4, kind: output, shape index: {}]  }
   0x1   :  { %10 = vsyncpa [#allocation4], 0 }
   0x2   :  { %12 = vsyncpa [#allocation4 + $0x1], 0  ;;  %s1118_s15 = smov 0   ;;  %s1120_s16 = smov 0  }
   0x3   :  { %s1122_s17 = smov 0   ;;  %s1124_s18 = smov 0  }
   0x4 LB: > { %s1139_s19 = sadd.s32 4294967295, %s1081_s18   ;;  %s769_s20 = sadd.s32 4294967294, %s1081_s18   ;;  %s1081_s18 = sphi %s1124_s18, %s1357_s18   ;;  %s1077_s17 = sphi %s1122_s17, %s1356_s17   ;;  %s1073_s16 = sphi %s1120_s16, %s1355_s16   ;;  %s1069_s15 = sphi %s1118_s15, %s1354_s15  }
   0x5   : > { %s1143_s21 = sadd.s32 1, %s1081_s18   ;;  %s114_s22 = sadd.s32 1, %s1077_s17 }
   0x6   : > { %s111_s23 = ssub.s32 %s1081_s18, %s1143_s21  ;;  %p124_p0 = scmp.ne.s32.totalorder %s1077_s17, %s1073_s16 }
   0x7   : > { %p112_p1 = scmp.eq.s32.totalorder %s111_s23, 0  ;;  %p125_p2 = scmp.eq.s32.totalorder %s1139_s19, 1 }
   0x8   : > { %p130_p3 = scmp.ne.s32.totalorder %s1073_s16, %s1069_s15  ;;  %p131_p4 = scmp.eq.s32.totalorder %s769_s20, 1 }
   0x9   : > { %s1154_s24 = scalar_select %p112_p1, %s1077_s17, %s114_s22  }
   0xa   : > { %p1156_p5 = por %p125_p2, %p124_p0  ;;  %p1160_p6 = por %p131_p4, %p130_p3 }
   0xb   : > { %p770_p7 = scmp.ge.s32.totalorder %s1081_s18, 1  ;;  %p138_p8 = scmp.lt.s32.totalorder %s1081_s18, 3 }
   0xc   : > { %s1341_s25 = scalar_select %p1156_p5, 1, 0 }
   0xd   : > { %s1342_s26 = scalar_select %p1160_p6, 1, 0 }
   0xe   : > { %p1338_p9 = scmp.eq.s32.totalorder %s1139_s19, 0  ;;  %p1167_p10 = pnand %p770_p7, %p138_p8 }
   0xf   : > { %s1083_s28 = smov [#allocation2]   ;;  %s987_s7 = scalar_lea.hbm %s1335_s2, 3072 }
  0x10   : > { %s1343_s27 = scalar_select %p1167_p10, 1, 0 }
  0x11   : > { %s153_s29 = sshll.u32 %s1083_s28, 4  ;;  %p907_p11 = pneg %p1167_p10  ;;  %s154_s29 = int_to_ptr.vmem [resolvable:$true] %s153_s29 }
  0x12   : > { %p988_p13 = scmp.ne.s32.totalorder %s1335_s2, %s987_s7  ;;  %p994_p3 = scmp.lt.u32.totalorder %s987_s7, %s1335_s2 }
  0x13   : > { %p1175_p12 = pnand %p1338_p9, %p907_p11 }
  0x15   : > { %p989_p0 = pneg %p1175_p12 }
  0x17   : > { %p990_p1 = pnand %p989_p0, %p988_p13 }
  0x19   : > { %p991_p2 = pneg %p990_p1 }
  0x1b   : > { %p996_p4 = pnand %p994_p3, %p991_p2 }
  0x1d   : > { %999 = shalt.err (!%p996_p4)
}
  0x1e   : > { %s1000_s12 = scalar_lea.vmem %s154_s29, 3072  ;;  %p1008_p9 = scmp.lt.s32.totalorder %s154_s29, %s154_s29 }
  0x1f   : > { %p1001_p7 = scmp.ne.s32.totalorder %s154_s29, %s1000_s12  ;;  %p1009_p6 = scmp.lt.s32.totalorder %s1000_s12, %s1000_s12 }
  0x21   : > { %p1003_p8 = pnand %p1001_p7, %p989_p0  ;;  %p1010_p5 = por %p1009_p6, %p1008_p9 }
  0x23   : > { %p1004_p11 = pneg %p1003_p8 }
  0x25   : > { %p1011_p10 = pnand %p1010_p5, %p1004_p11 }
  0x27   : > { %1014 = shalt.err (!%p1011_p10)
}
  0x28   : > { %s1084_s13 = smov 64   ;;  %s1085_s14 = smov 4  }
  0x29   : > { %910 = dma.hbm_to_vmem [thread:$0]  (!%p1175_p12), %s1335_s2, 3072, %s154_s29, [#allocation3], %s1084_s13, %s1084_s13, %s1085_s14  }
  0x2a   : > { %p1345_p13 = scmp.ne.s32.totalorder %s1343_s27, 0 }
  0x2b   : > { %p1346_p1 = scmp.eq.s32.totalorder (!%p1345_p13), %s1139_s19, 0 }
  0x2c   : > { %180 = sbr.rel (%p1345_p13) target bundleno = 677 (0x2a5), region = 36 }
  0x33   : > { %1060 = dma.done.wait (%p1346_p1), [#allocation3], 3072   ;;  %p1347_p0 = pmov %p1346_p1 }
  0x34   : > { %p206_p5 = scmp.lt.s32.totalorder %s1139_s19, 1  ;;  %v1086_v0 = vmov 0   ;;  %v1087_v1 = vmov 0.0   ;;  %vm235_vm0 = vcmask 1047552   ;;  %vm236_vm1 = vsmask.f32 7424 }
  0x35   : > { %1062 = vsyncadd (%p1347_p0), [#allocation3], 4294964224  ;;  %303 = vmatprep.mubr.bf16.mxu0 %v1086_v0  ;;  %841 = vmatprep.subr.bf16.mxu1 %v1087_v1  ;;  %vm264_vm2 = vcmask 1045504   ;;  %v960_v3 = vld [vmem:[%s1334_s1 + $0x4] ss:$8 sps:$4 sm:$0x3f]   ;;  %v314_v36 = vlaneseq }
  0x36   : > { %s207_s23 = scalar_select %p206_p5, %s1139_s19, 1  ;;  %v962_v6 = vld [vmem:[%s1334_s1] ss:$8 sps:$4 sm:$0x3f]   ;;  %781 = vmatprep.subr.msk.bf16.mxu0 %vm264_vm2, %v960_v3  ;;  %v964_v11 = vld [vmem:[#allocation2 + $0x48] sm:$0xff]   ;;  %vm1215_vm3 = vmand %vm235_vm0, %vm236_vm1  ;;  %vm228_vm4 = vcmask 1040384  }
  0x37   : > { %s1088_s7 = smov 4   ;;  %v963_v7 = vld [vmem:[#allocation2 + $0x40] sm:$0xff]   ;;  %v266_v10 = vsel %vm264_vm2, %v962_v6, 0  ;;  %v965_v16 = vld [vmem:[#allocation2 + $0x50] sm:$0xff]   ;;  %s1089_s10 = smov 8   ;;  %v967_v17 = vld [vmem:[#allocation2 + $0x58] sm:$0xff]  }
  0x38   : > { %s812_s28 = sshll.u32 %s207_s23, 3  ;;  %842 = vmatpush3.bf16.msra.mxu1 %v963_v7  ;;  %272 = vmatpush1.bf16.msra.mxu0 %v266_v10  ;;  %v969_v18 = vld [vmem:[#allocation2 + $0x60] sm:$0xff]   ;;  %v971_v19 = vld [vmem:[#allocation2 + $0x68] sm:$0xff]   ;;  %vm229_vm5 = vsmask.f32 256  ;;  %vm244_vm7 = vcmask 31744  }
  0x39   : > { %s210_s29 = scalar_lea.vmem %s1333_s0, %s812_s28  ;;  %843 = vmatprep.subr.bf16.mxu1 %v1087_v1  ;;  %861 = vmatprep.subr.bf16.mxu0 %v1087_v1  ;;  %vm1229_vm6 = vmand %vm228_vm4, %vm229_vm5  ;;  %vm248_vm8 = vcmask 64512   ;;  %vm261_vm9 = vcmask 97280   ;;  %v966_v23 = vld [vmem:[#allocation2] sm:$0xff]   ;;  %v968_v27 = vld [vmem:[#allocation2 + $0x8] sm:$0xff]   ;;  %vm1090_vm10 = vmmov 0   ;;  %v1248_v37 = vshrl.u32 %v314_v36, 7 }
  0x3a   : > { %v959_v2 = vld [vmem:[%s210_s29] sm:$0xff]   ;;  %v970_v28 = vld [vmem:[#allocation2 + $0x10] sm:$0xff]   ;;  %v974_v31 = vld [vmem:[#allocation2 + $0x20] sm:$0xff]   ;;  %857 = vmatprep.mubr.msk.bf16.mxu1 %vm1090_vm10, %v1087_v1  ;;  %s203_s13 = sand.u32 1, %s1073_s16   ;;  %s813_s20 = sshll.u32 %s1139_s19, 8 }
  0x3b   : > { %239 = vrot.lane.b32.xlu0 %v959_v2, %s1088_s7  ;;  %v221_v4 = vshrl.u32 %v959_v2, 16  ;;  %v224_v5 = vshll.u32 %v959_v2, 16  ;;  %v972_v29 = vld [vmem:[#allocation2 + $0x18] sm:$0xff]   ;;  %v973_v30 = vld [vmem:[#allocation2 + $0x70] sm:$0xff]   ;;  %v976_v33 = vld [vmem:[#allocation2 + $0x28] sm:$0xff]   ;;  %v316_v38 = vsub.s32 0, %v1248_v37  ;;  %s1287_s5 = scalar_lea.hbm %s1337_s4, %s813_s20 }
  0x3c   : > { %844 = vmatpush3.bf16.msra.mxu1 %v964_v11  ;;  %v975_v32 = vld [vmem:[#allocation2 + $0x78] sm:$0xff]   ;;  %v977_v34 = vld [vmem:[#allocation2 + $0x30] sm:$0xff]   ;;  %v978_v49 = vld [vmem:[#allocation2 + $0x80] sm:$0xff]   ;;  %s775_s14 = sshll.u32 %s203_s13, 4  ;;  %s1291_s29 = scalar_lea.sflag [#allocation4], %s203_s13 }
  0x3d   : > { %v232_v8 = vrot.slane %v224_v5, 1  ;;  %v223_v9 = vrot.slane %v221_v4, 7  ;;  %845 = vmatprep.subr.bf16.mxu1 %v1087_v1  ;;  %v979_v35 = vld [vmem:[#allocation2 + $0x38] sm:$0xff]   ;;  %v980_v52 = vld [vmem:[#allocation2 + $0x88] sm:$0xff]   ;;  %v981_v56 = vld [vmem:[#allocation2 + $0x90] sm:$0xff]   ;;  %s205_s22 = scalar_lea.vmem [#allocation5], %s775_s14 }
  0x3e   : > { %v1254_v39 = vld [vmem:[%s1336_s3] sm:$0xf]  ;;  %v983_v59 = vld [vmem:[#allocation2 + $0xa0] sm:$0xff]   ;;  %v984_v60 = vld [vmem:[#allocation2 + $0xa8] sm:$0xff]   ;;  %s695_s23 = sshll.u32 %s205_s22, 4  ;;  %p1352_p9 = scmp.ne.s32.totalorder %s1341_s25, 0  ;;  %s1289_s23 = int_to_ptr.vmem [resolvable:$true] %s695_s23 }
  0x3f   : > { %v233_v13 = vor.u32 %v232_v8, %v221_v4  ;;  %v226_v14 = vor.u32 %v224_v5, %v223_v9  ;;  %v317_v40 = vrot.slane %v1254_v39, %v316_v38  ;;  %v982_v58 = vld [vmem:[#allocation2 + $0x98] sm:$0xff]   ;;  %v985_v61 = vld [vmem:[#allocation2 + $0xb0] sm:$0xff]   ;;  %s1015_s19 = scalar_lea.vmem %s1289_s23, 256  ;;  %s1091_s27 = smov [#allocation5]  }
  0x40   : > { %846 = vmatpush3.bf16.msra.mxu1 %v965_v16  ;;  %v986_v63 = vld [vmem:[#allocation2 + $0xb8] sm:$0xff]   ;;  %p1016_p6 = scmp.ne.s32.totalorder %s1289_s23, %s1015_s19  ;;  %s1019_s6 = sshll.u32 %s1091_s27, 4  ;;  %s1020_s6 = int_to_ptr.vmem [resolvable:$false] %s1019_s6 }
  0x41   : > { %v238_v15 = vsel %vm1215_vm3, %v233_v13, 0  ;;  %847 = vmatprep.subr.bf16.mxu1 %v1087_v1  ;;  %v231_v22 = vsel %vm1229_vm6, 0, %v226_v14  ;;  %v657_v14 = vsub.s32 1, %v1248_v37  ;;  %s1021_s7 = scalar_lea.vmem %s1020_s6, 512  ;;  %p1022_p2 = scmp.lt.s32.totalorder %s1289_s23, %s1020_s6 }
  0x42   : > { %242 = vrot.lane.b32.xlu0 %v238_v15, %s1089_s10  ;;  %v665_v15 = vsub.s32 3, %v1248_v37  ;;  %p1017_p10 = pnand %p1016_p6, %p1352_p9  ;;  %p1023_p3 = scmp.lt.s32.totalorder %s1021_s7, %s1015_s19 }
  0x44   : > { %848 = vmatpush3.bf16.msra.mxu1 %v967_v17  ;;  %p1018_p12 = pneg %p1017_p10  ;;  %p1024_p4 = por %p1023_p3, %p1022_p2 }
  0x45   : > { %849 = vmatprep.subr.bf16.mxu1 %v1087_v1 }
  0x46   : > { %p1025_p7 = pnand %p1024_p4, %p1018_p12 }
  0x48   : > { %850 = vmatpush3.bf16.msra.mxu1 %v969_v18 }
  0x49   : > { %851 = vmatprep.subr.bf16.mxu1 %v1087_v1 }
  0x4c   : > { %852 = vmatpush3.bf16.msra.mxu1 %v971_v19  ;;  %v673_v19 = vsub.s32 2, %v1248_v37 }
  0x4d   : > { %853 = vmatprep.subr.bf16.mxu1 %v1087_v1 }
  0x50   : > { %854 = vmatpush3.bf16.msra.mxu1 %v973_v30 }
  0x51   : > { %855 = vmatprep.subr.bf16.mxu1 %v1087_v1 }
  0x54   : > { %856 = vmatpush3.bf16.msra.mxu1 %v975_v32 }
  0x55   : > { %881 = vmatprep.subr.bf16.mxu1 %v1087_v1 }
  0xad   : > { %v240_v21 = vpop.permute.xlu0 %239 }
  0xae   : > { %v247_v24 = vsel %vm244_vm7, %v231_v22, %v240_v21  ;;  %v666_v21 = vrot.slane %v1254_v39, %v665_v15 }
  0xb4   : > { %v243_v25 = vpop.permute.xlu0 %242 }
  0xb5   : > { %v250_v26 = vsel %vm248_vm8, %v247_v24, %v243_v25 }
  0xb6   : > { %782 = vmatmul.mubr.msk.bf16.vlgmr.msra.gmra.mrb[0].mxu0 %vm261_vm9, %v250_v26  ;;  %v674_v26 = vrot.slane %v1254_v39, %v673_v19 }
  0xb7   : > { %862 = vmatpush3.bf16.msra.mxu0 %v966_v23  ;;  %877 = vmatprep.mubr.msk.bf16.mxu0 %vm1090_vm10, %v1087_v1 }
  0xb8   : > { %863 = vmatprep.subr.bf16.mxu0 %v1087_v1 }
  0xbb   : > { %864 = vmatpush3.bf16.msra.mxu0 %v968_v27 }
  0xbc   : > { %865 = vmatprep.subr.bf16.mxu0 %v1087_v1 }
  0xbf   : > { %866 = vmatpush3.bf16.msra.mxu0 %v970_v28 }
  0xc0   : > { %867 = vmatprep.subr.bf16.mxu0 %v1087_v1 }
  0xc3   : > { %868 = vmatpush3.bf16.msra.mxu0 %v972_v29 }
  0xc4   : > { %869 = vmatprep.subr.bf16.mxu0 %v1087_v1 }
  0xc7   : > { %870 = vmatpush3.bf16.msra.mxu0 %v974_v31 }
  0xc8   : > { %871 = vmatprep.subr.bf16.mxu0 %v1087_v1 }
  0xcb   : > { %872 = vmatpush3.bf16.msra.mxu0 %v976_v33 }
  0xcc   : > { %873 = vmatprep.subr.bf16.mxu0 %v1087_v1 }
  0xcf   : > { %874 = vmatpush3.bf16.msra.mxu0 %v977_v34 }
  0xd0   : > { %875 = vmatprep.subr.bf16.mxu0 %v1087_v1 }
  0xd3   : > { %876 = vmatpush3.bf16.msra.mxu0 %v979_v35 }
 0x189   : > { %v305_v41 = vpop.f32.mrb[0].mxu0 }
 0x18a   : > { %v318_v42 = vadd.f32 %v317_v40, %v305_v41  ;;  %v1257_v43 = vpop.f32.mrb[1].mxu0 }
 0x18b   : > { %v309_v44 = vpop.f32.mrb[2].mxu0 }
 0x18c   : > { %v319_v45 = vadd.f32 %v317_v40, %v309_v44  ;;  %v1259_v46 = vpop.f32.mrb[3].mxu0  ;;  %v320_v47 = vmax.f32 %v318_v42, 0.0 }
 0x18e   : > { %v321_v48 = vmax.f32 %v319_v45, 0.0 }
 0x190   : > { %v322_v50 = vpack.c.bf16 %v321_v48, %v320_v47 }
 0x192   : > { %v324_v51 = vshrl.u32 %v322_v50, 16  ;;  %858 = vmatmul.mubr.bf16.vlgmr.msra.gmra.mrb[0].mxu1 %v322_v50  ;;  %v327_v54 = vshll.u32 %v322_v50, 16 }
 0x193   : > { %882 = vmatpush3.bf16.msra.mxu1 %v978_v49  ;;  %897 = vmatprep.mubr.msk.bf16.mxu1 %vm1090_vm10, %v1087_v1 }
 0x194   : > { %883 = vmatprep.subr.bf16.mxu1 %v1087_v1  ;;  %v326_v53 = vrot.slane %v324_v51, 7  ;;  %v332_v62 = vrot.slane %v327_v54, 1 }
 0x196   : > { %v329_v55 = vor.u32 %v327_v54, %v326_v53  ;;  %v333_v0 = vor.u32 %v332_v62, %v324_v51 }
 0x197   : > { %884 = vmatpush3.bf16.msra.mxu1 %v980_v52 }
 0x198   : > { %v331_v57 = vsel %vm1229_vm6, 0, %v329_v55  ;;  %885 = vmatprep.subr.bf16.mxu1 %v1087_v1  ;;  %v335_v2 = vsel %vm1215_vm3, %v333_v0, 0 }
 0x199   : > { %878 = vmatmul.mubr.bf16.vlgmr.msra.gmra.mrb[4].mxu0 %v331_v57 }
 0x19b   : > { %886 = vmatpush3.bf16.msra.mxu1 %v981_v56 }
 0x19c   : > { %887 = vmatprep.subr.bf16.mxu1 %v1087_v1 }
 0x19f   : > { %888 = vmatpush3.bf16.msra.mxu1 %v982_v58 }
 0x1a0   : > { %889 = vmatprep.subr.bf16.mxu1 %v1087_v1 }
 0x1a3   : > { %890 = vmatpush3.bf16.msra.mxu1 %v983_v59 }
 0x1a4   : > { %891 = vmatprep.subr.bf16.mxu1 %v1087_v1 }
 0x1a7   : > { %892 = vmatpush3.bf16.msra.mxu1 %v984_v60 }
 0x1a8   : > { %893 = vmatprep.subr.bf16.mxu1 %v1087_v1 }
 0x1ab   : > { %894 = vmatpush3.bf16.msra.mxu1 %v985_v61 }
 0x1ac   : > { %895 = vmatprep.subr.bf16.mxu1 %v1087_v1  ;;  %v658_v1 = vrot.slane %v1254_v39, %v657_v14 }
 0x1af   : > { %896 = vmatpush3.bf16.msra.mxu1 %v986_v63 }
 0x1b2   : > { %898 = vmatmul.mubr.bf16.vlgmr.msra.gmra.mrb[4].mxu1 %v335_v2 }
 0x265   : > { %v451_v3 = vpop.f32.mrb[0].mxu1 }
 0x266   : > { %v859_v4 = vpop.f32.mrb[1].mxu1 }
 0x267   : > { %v454_v5 = vpop.f32.mrb[2].mxu1 }
 0x268   : > { %v860_v6 = vpop.f32.mrb[3].mxu1 }
 0x26c   : > { %v540_v7 = vpop.f32.mrb[4].mxu0 }
 0x26d   : > { %v541_v8 = vadd.f32 %v540_v7, %v451_v3  ;;  %v879_v9 = vpop.f32.mrb[5].mxu0 }
 0x26e   : > { %v543_v10 = vpop.f32.mrb[6].mxu0 }
 0x26f   : > { %v544_v11 = vadd.f32 %v543_v10, %v454_v5  ;;  %v880_v13 = vpop.f32.mrb[7].mxu0 }
 0x285   : > { %v646_v12 = vpop.f32.mrb[4].mxu1 }
 0x286   : > { %v653_v16 = vadd.f32 %v646_v12, %v541_v8  ;;  %v899_v17 = vpop.f32.mrb[5].mxu1 }
 0x287   : > { %v649_v18 = vpop.f32.mrb[6].mxu1 }
 0x288   : > { %v659_v20 = vadd.f32 %v658_v1, %v653_v16  ;;  %v654_v22 = vadd.f32 %v649_v18, %v544_v11  ;;  %v900_v23 = vpop.f32.mrb[7].mxu1 }
 0x28a   : > { %v661_v24 = vmax.f32 %v659_v20, 0.0  ;;  %v660_v25 = vadd.f32 %v658_v1, %v654_v22 }
 0x28c   : > { %v667_v27 = vmul.f32 %v666_v21, %v661_v24  ;;  %v662_v28 = vmax.f32 %v660_v25, 0.0 }
 0x28e   : > { %v669_v29 = vadd.f32 %v667_v27, %v1257_v43  ;;  %v668_v30 = vmul.f32 %v666_v21, %v662_v28 }
 0x290   : > { %v675_v31 = vadd.f32 %v674_v26, %v669_v29  ;;  %v670_v32 = vadd.f32 %v668_v30, %v1259_v46 }
 0x292   : > { %v677_v33 = vmax.f32 %v675_v31, 0.0  ;;  %v676_v34 = vadd.f32 %v674_v26, %v670_v32 }
 0x294   : > { %679 = vst [vmem:[%s205_s22] sm:$0xff] %v677_v33  ;;  %v678_v35 = vmax.f32 %v676_v34, 0.0 }
 0x296   : > { %680 = vst [vmem:[%s205_s22 + $0x8] sm:$0xff] %v678_v35 }
 0x297   : > { %1028 = shalt.err (!%p1025_p7)
}
 0x298   : > { %s1029_s8 = scalar_lea.hbm %s1287_s5, 256  ;;  %s1033_s12 = scalar_lea.hbm %s1337_s4, 512 }
 0x299   : > { %p1030_p8 = scmp.ne.s32.totalorder %s1287_s5, %s1029_s8  ;;  %p1034_p1 = scmp.lt.u32.totalorder %s1287_s5, %s1337_s4 }
 0x29a   : > { %p1035_p0 = scmp.lt.u32.totalorder %s1033_s12, %s1029_s8  ;;  %p1037_p6 = scmp.lt.u32.totalorder %s1029_s8, %s1287_s5 }
 0x29b   : > { %p1031_p11 = pnand %p1030_p8, %p1352_p9 }
 0x29c   : > { %p1036_p5 = por %p1035_p0, %p1034_p1 }
 0x29d   : > { %p1032_p13 = pneg %p1031_p11 }
 0x29e   : > { %p1038_p10 = por %p1037_p6, %p1036_p5 }
 0x2a0   : > { %p1039_p12 = pnand %p1038_p10, %p1032_p13 }
 0x2a2   : > { %1042 = shalt.err (!%p1039_p12)
}
 0x2a3   : > { %s1092_s20 = smov 128  }
 0x2a4   : > { %905 = dma.vmem_to_hbm [thread:$0]  (%p1352_p9), %s1289_s23, 256, %s1287_s5, %s1291_s29, %s1092_s20, %s1092_s20, %s1089_s10  }
 0x2a5 PF: > { %p917_p2 = scmp.ge.s32.totalorder %s1081_s18, 2  ;;  %s710_s22 = sand.u32 1, %s1069_s15  }
 0x2a6   : > { %p1353_p3 = scmp.ne.s32.totalorder %s1342_s26, 0  ;;  %s711_s28 = scalar_lea.sflag [#allocation4], %s710_s22 }
 0x2a8   : > { %p912_p4 = pnand %p917_p2, %p1353_p3 }
 0x2aa   : > { %1064 = dma.done.wait (!%p912_p4), %s711_s28, 256  }
 0x2ab   : > { %1066 = vsyncadd (!%p912_p4), %s711_s28, 4294967040  ;;  %p15_p7 = scmp.ge.s32.totalorder %s1143_s21, 4   ;;  %s1354_s15 = smov %s1073_s16 }
 0x2ac   : > { %s1355_s16 = smov %s1077_s17  ;;  %s1356_s17 = smov %s1154_s24 }
 0x2ad   : > { %s1357_s18 = smov %s1143_s21  ;;  %17 = sbr.rel (!%p15_p7) target bundleno = 4 (0x4), region = 78 }
 0x2b4   :  { %716 = vsyncpa [#allocation3], 1 }
 0x2b5   :  { %718 = vsyncpa [#allocation3 + $0x1], 1 }
 0x2b6   :  { %719 = vsyncpa [#allocation4], 1 }
 0x2b7   :  { %721 = vsyncpa [#allocation4 + $0x1], 1 }

</bundles_post_ra>
